<compile_context>
chip_gen: v7x
topology: tpu7x:2x2x1
jax: 0.10.0
libtpu: 0.0.40
codegen_flags: <defaults>
</compile_context>

<pallas_src>
import jax
import jax.numpy as jnp
from jax.experimental import pallas as pl
from jax.experimental.pallas import tpu as pltpu

BN_EPS = 1e-5
LANE = 128
VMEM_BUDGET_BYTES = 32 * 1024 * 1024   # safe scoped-VMEM budget on v5e / v6e / v7x


def _round_up(n, m):
    return ((n + m - 1) // m) * m


def _make_fused_mlp_kernel(n_hidden, mxu_dtype=None):
    """Build the fused kernel: refs = [x, (w,b,gamma,beta)*n_hidden, (w,b)_final, out]."""

    def _mm(lhs, w_ref):
        rhs = w_ref[...]
        if mxu_dtype is not None:
            lhs = lhs.astype(mxu_dtype)
            rhs = rhs.astype(mxu_dtype)
        return jnp.dot(lhs, rhs, preferred_element_type=jnp.float32)

    def kernel(*refs):
        x_ref = refs[0]
        o_ref = refs[-1]
        p = refs[1:-1]

        h = x_ref[...].astype(jnp.float32)
        idx = 0
        for _ in range(n_hidden):
            w, b, g, beta = p[idx], p[idx + 1], p[idx + 2], p[idx + 3]
            idx += 4
            y = _mm(h, w) + b[...]                      # Linear (MXU, f32 accumulate)
            y = jnp.maximum(y, 0.0)                     # ReLU (VPU)
            # BatchNorm1d, training-mode batch stats (biased variance), two-pass
            # diff-based variance for numerical safety.
            mean = jnp.mean(y, axis=0, keepdims=True)
            diff = y - mean
            var = jnp.mean(diff * diff, axis=0, keepdims=True)
            scale = g[...] * jax.lax.rsqrt(var + BN_EPS)   # gamma folded into inv-std (EUP rsqrt)
            h = diff * scale + beta[...]
            # Dropout(p=0) -> identity (module default); omitted.
        w, b = p[idx], p[idx + 1]
        o_ref[...] = (_mm(h, w) + b[...]).astype(o_ref.dtype)

    return kernel


def _pad2(a, rows, cols, cval=0.0):
    return jnp.pad(a, ((0, rows - a.shape[0]), (0, cols - a.shape[1])),
                   constant_values=cval)


def init_shared_subnetwork_params(key, dims):
    """Deterministic parameter init mimicking nn.Linear / nn.BatchNorm1d shapes.

    Linear weights are stored as (in_dim, out_dim) (transposed vs. PyTorch's (out, in));
    biases / BN params as (1, out_dim).  BN gamma=1, beta=0 (PyTorch defaults).
    """
    params = []
    for i in range(len(dims) - 1):
        fan_in, fan_out = dims[i], dims[i + 1]
        key, kw, kb = jax.random.split(key, 3)
        bound = 1.0 / jnp.sqrt(fan_in)
        w = jax.random.uniform(kw, (fan_in, fan_out), jnp.float32, -bound, bound)
        b = jax.random.uniform(kb, (1, fan_out), jnp.float32, -bound, bound)
        if i < len(dims) - 2:   # hidden layer: Linear -> ReLU -> BN -> Dropout(0)
            gamma = jnp.ones((1, fan_out), jnp.float32)
            beta = jnp.zeros((1, fan_out), jnp.float32)
            params.append(("hidden", w, b, gamma, beta))
        else:                   # final output Linear
            params.append(("out", w, b))
    return params


def shared_subnetwork_apply(params, x, mxu_dtype=None):
    """Run the SharedSubNetwork forward pass as a single fused Pallas kernel."""
    n, in_dim = x.shape
    n_hidden = sum(1 for layer in params if layer[0] == "hidden")
    assert params[-1][0] == "out"

    # ---- lane-pad every feature dimension to a multiple of 128 (wrapper side) ----
    in_p = _round_up(in_dim, LANE)
    flat = [_pad2(x, n, in_p)]
    prev_p = in_p
    widths_p = []
    for layer in params:
        if layer[0] == "hidden":
            _, w, b, g, beta = layer
            out_p = _round_up(w.shape[1], LANE)
            flat += [
                _pad2(w, prev_p, out_p),            # zero rows/cols: exact
                _pad2(b, 1, out_p),
                _pad2(g, 1, out_p, cval=1.0),       # padded cols have diff==0, value irrelevant
                _pad2(beta, 1, out_p),
            ]
        else:
            _, w, b = layer
            out_p = _round_up(w.shape[1], LANE)
            flat += [_pad2(w, prev_p, out_p), _pad2(b, 1, out_p)]
        widths_p.append(out_p)
        prev_p = out_p

    # ---- rough f32 VMEM footprint check (whole-batch residency) ----
    act_bytes = 4 * n * max([in_p] + widths_p)
    param_bytes = sum(int(a.size) * 4 for a in flat[1:])
    out_bytes = 4 * n * widths_p[-1]
    est = 2 * (4 * n * in_p + param_bytes + out_bytes) + 3 * act_bytes
    if est > VMEM_BUDGET_BYTES:
        # TODO(synk): batch-tiled grid + cross-tile BN sum/sumsq reduction for large batches.
        raise ValueError(f"batch too large for fused whole-batch kernel (~{est} bytes of VMEM)")

    kernel = _make_fused_mlp_kernel(n_hidden, mxu_dtype)
    vmem_spec = pl.BlockSpec(memory_space=pltpu.VMEM)   # whole-array blocks, VMEM resident
    out_padded = pl.pallas_call(
        kernel,
        out_shape=jax.ShapeDtypeStruct((n, widths_p[-1]), jnp.float32),
        in_specs=[vmem_spec] * len(flat),
        out_specs=vmem_spec,
        compiler_params=pltpu.CompilerParams(vmem_limit_bytes=VMEM_BUDGET_BYTES),
    )(*flat)

    out_dim = params[-1][1].shape[1]
    return out_padded[:, :out_dim]


def _reference_forward(params, x):
    """Pure-JAX reference (PyTorch training-mode BN semantics)."""
    h = x
    for layer in params:
        if layer[0] == "hidden":
            _, w, b, gamma, beta = layer
            y = jnp.maximum(h @ w + b, 0.0)
            mean = jnp.mean(y, axis=0, keepdims=True)
            var = jnp.mean((y - mean) ** 2, axis=0, keepdims=True)
            h = (y - mean) * jax.lax.rsqrt(var + BN_EPS) * gamma + beta
        else:
            _, w, b = layer
            h = h @ w + b
    return h


if __name__ == "__main__":
    key = jax.random.PRNGKey(0)
    dims = [32, 64, 48, 16]     # dims[0]=input features, dims[-1]=output features
    batch = 8

    key, kx = jax.random.split(key)
    x = jax.random.normal(kx, (batch, dims[0]), jnp.float32)

    params = init_shared_subnetwork_params(key, dims)

    out = shared_subnetwork_apply(params, x)
    out = jax.block_until_ready(out)

    ref = _reference_forward(params, x)
    assert out.shape == (batch, dims[-1])
    assert jnp.allclose(out, ref, atol=1e-4, rtol=1e-4), "mismatch vs reference"

    print("KERNEL_OK")
</pallas_src>

<mosaic_0001>
module attributes {stable_mosaic.version = 11 : i64} {
  func.func @kernel(%arg0: memref<8x128xf32, #tpu.memory_space<vmem>>, %arg1: memref<128x128xf32, #tpu.memory_space<vmem>>, %arg2: memref<1x128xf32, #tpu.memory_space<vmem>>, %arg3: memref<1x128xf32, #tpu.memory_space<vmem>>, %arg4: memref<1x128xf32, #tpu.memory_space<vmem>>, %arg5: memref<128x128xf32, #tpu.memory_space<vmem>>, %arg6: memref<1x128xf32, #tpu.memory_space<vmem>>, %arg7: memref<1x128xf32, #tpu.memory_space<vmem>>, %arg8: memref<1x128xf32, #tpu.memory_space<vmem>>, %arg9: memref<128x128xf32, #tpu.memory_space<vmem>>, %arg10: memref<1x128xf32, #tpu.memory_space<vmem>>, %arg11: memref<8x128xf32, #tpu.memory_space<vmem>>) attributes {dimension_semantics = [], scalar_prefetch = 0 : i64, scratch_operands = 0 : i64, tpu.core_type = #tpu.core_type<tc>} {
    %c0 = arith.constant 0 : index
    %c0_0 = arith.constant 0 : index
    %0 = vector.load %arg0[%c0, %c0_0] : memref<8x128xf32, #tpu.memory_space<vmem>>, vector<8x128xf32>
    %c0_1 = arith.constant 0 : index
    %c0_2 = arith.constant 0 : index
    %1 = vector.load %arg1[%c0_1, %c0_2] : memref<128x128xf32, #tpu.memory_space<vmem>>, vector<128x128xf32>
    %cst = arith.constant dense<0.000000e+00> : vector<8x128xf32>
    %2 = tpu.matmul %0, %1, %cst {dimension_numbers = #tpu.dot_dimension_numbers<[1], [0], [0], [1], [0, 0, 1, 1], [], []>} : vector<8x128xf32>, vector<128x128xf32>, vector<8x128xf32> -> vector<8x128xf32>
    %c0_3 = arith.constant 0 : index
    %c0_4 = arith.constant 0 : index
    %3 = vector.load %arg2[%c0_3, %c0_4] : memref<1x128xf32, #tpu.memory_space<vmem>>, vector<1x128xf32>
    %4 = vector.broadcast %3 : vector<1x128xf32> to vector<8x128xf32>
    %5 = arith.addf %2, %4 : vector<8x128xf32>
    %cst_5 = arith.constant 0.000000e+00 : f32
    %6 = vector.broadcast %cst_5 : f32 to vector<8x128xf32>
    %7 = arith.maximumf %5, %6 : vector<8x128xf32>
    %cst_6 = arith.constant dense<0.000000e+00> : vector<128xf32>
    %8 = vector.multi_reduction <add>, %7, %cst_6 [0] : vector<8x128xf32> to vector<128xf32>
    %9 = vector.shape_cast %8 : vector<128xf32> to vector<1x128xf32>
    %cst_7 = arith.constant 8.000000e+00 : f32
    %10 = vector.broadcast %cst_7 : f32 to vector<1x128xf32>
    %11 = arith.divf %9, %10 : vector<1x128xf32>
    %12 = vector.broadcast %11 : vector<1x128xf32> to vector<8x128xf32>
    %13 = arith.subf %7, %12 : vector<8x128xf32>
    %14 = arith.mulf %13, %13 : vector<8x128xf32>
    %cst_8 = arith.constant dense<0.000000e+00> : vector<128xf32>
    %15 = vector.multi_reduction <add>, %14, %cst_8 [0] : vector<8x128xf32> to vector<128xf32>
    %16 = vector.shape_cast %15 : vector<128xf32> to vector<1x128xf32>
    %cst_9 = arith.constant 8.000000e+00 : f32
    %17 = vector.broadcast %cst_9 : f32 to vector<1x128xf32>
    %18 = arith.divf %16, %17 : vector<1x128xf32>
    %c0_10 = arith.constant 0 : index
    %c0_11 = arith.constant 0 : index
    %19 = vector.load %arg3[%c0_10, %c0_11] : memref<1x128xf32, #tpu.memory_space<vmem>>, vector<1x128xf32>
    %cst_12 = arith.constant 9.99999974E-6 : f32
    %20 = vector.broadcast %cst_12 : f32 to vector<1x128xf32>
    %21 = arith.addf %18, %20 : vector<1x128xf32>
    %22 = math.rsqrt %21 : vector<1x128xf32>
    %23 = arith.mulf %19, %22 : vector<1x128xf32>
    %24 = vector.broadcast %23 : vector<1x128xf32> to vector<8x128xf32>
    %25 = arith.mulf %13, %24 : vector<8x128xf32>
    %c0_13 = arith.constant 0 : index
    %c0_14 = arith.constant 0 : index
    %26 = vector.load %arg4[%c0_13, %c0_14] : memref<1x128xf32, #tpu.memory_space<vmem>>, vector<1x128xf32>
    %27 = vector.broadcast %26 : vector<1x128xf32> to vector<8x128xf32>
    %28 = arith.addf %25, %27 : vector<8x128xf32>
    %c0_15 = arith.constant 0 : index
    %c0_16 = arith.constant 0 : index
    %29 = vector.load %arg5[%c0_15, %c0_16] : memref<128x128xf32, #tpu.memory_space<vmem>>, vector<128x128xf32>
    %cst_17 = arith.constant dense<0.000000e+00> : vector<8x128xf32>
    %30 = tpu.matmul %28, %29, %cst_17 {dimension_numbers = #tpu.dot_dimension_numbers<[1], [0], [0], [1], [0, 0, 1, 1], [], []>} : vector<8x128xf32>, vector<128x128xf32>, vector<8x128xf32> -> vector<8x128xf32>
    %c0_18 = arith.constant 0 : index
    %c0_19 = arith.constant 0 : index
    %31 = vector.load %arg6[%c0_18, %c0_19] : memref<1x128xf32, #tpu.memory_space<vmem>>, vector<1x128xf32>
    %32 = vector.broadcast %31 : vector<1x128xf32> to vector<8x128xf32>
    %33 = arith.addf %30, %32 : vector<8x128xf32>
    %cst_20 = arith.constant 0.000000e+00 : f32
    %34 = vector.broadcast %cst_20 : f32 to vector<8x128xf32>
    %35 = arith.maximumf %33, %34 : vector<8x128xf32>
    %cst_21 = arith.constant dense<0.000000e+00> : vector<128xf32>
    %36 = vector.multi_reduction <add>, %35, %cst_21 [0] : vector<8x128xf32> to vector<128xf32>
    %37 = vector.shape_cast %36 : vector<128xf32> to vector<1x128xf32>
    %cst_22 = arith.constant 8.000000e+00 : f32
    %38 = vector.broadcast %cst_22 : f32 to vector<1x128xf32>
    %39 = arith.divf %37, %38 : vector<1x128xf32>
    %40 = vector.broadcast %39 : vector<1x128xf32> to vector<8x128xf32>
    %41 = arith.subf %35, %40 : vector<8x128xf32>
    %42 = arith.mulf %41, %41 : vector<8x128xf32>
    %cst_23 = arith.constant dense<0.000000e+00> : vector<128xf32>
    %43 = vector.multi_reduction <add>, %42, %cst_23 [0] : vector<8x128xf32> to vector<128xf32>
    %44 = vector.shape_cast %43 : vector<128xf32> to vector<1x128xf32>
    %cst_24 = arith.constant 8.000000e+00 : f32
    %45 = vector.broadcast %cst_24 : f32 to vector<1x128xf32>
    %46 = arith.divf %44, %45 : vector<1x128xf32>
    %c0_25 = arith.constant 0 : index
    %c0_26 = arith.constant 0 : index
    %47 = vector.load %arg7[%c0_25, %c0_26] : memref<1x128xf32, #tpu.memory_space<vmem>>, vector<1x128xf32>
    %cst_27 = arith.constant 9.99999974E-6 : f32
    %48 = vector.broadcast %cst_27 : f32 to vector<1x128xf32>
    %49 = arith.addf %46, %48 : vector<1x128xf32>
    %50 = math.rsqrt %49 : vector<1x128xf32>
    %51 = arith.mulf %47, %50 : vector<1x128xf32>
    %52 = vector.broadcast %51 : vector<1x128xf32> to vector<8x128xf32>
    %53 = arith.mulf %41, %52 : vector<8x128xf32>
    %c0_28 = arith.constant 0 : index
    %c0_29 = arith.constant 0 : index
    %54 = vector.load %arg8[%c0_28, %c0_29] : memref<1x128xf32, #tpu.memory_space<vmem>>, vector<1x128xf32>
    %55 = vector.broadcast %54 : vector<1x128xf32> to vector<8x128xf32>
    %56 = arith.addf %53, %55 : vector<8x128xf32>
    %c0_30 = arith.constant 0 : index
    %c0_31 = arith.constant 0 : index
    %57 = vector.load %arg9[%c0_30, %c0_31] : memref<128x128xf32, #tpu.memory_space<vmem>>, vector<128x128xf32>
    %cst_32 = arith.constant dense<0.000000e+00> : vector<8x128xf32>
    %58 = tpu.matmul %56, %57, %cst_32 {dimension_numbers = #tpu.dot_dimension_numbers<[1], [0], [0], [1], [0, 0, 1, 1], [], []>} : vector<8x128xf32>, vector<128x128xf32>, vector<8x128xf32> -> vector<8x128xf32>
    %c0_33 = arith.constant 0 : index
    %c0_34 = arith.constant 0 : index
    %59 = vector.load %arg10[%c0_33, %c0_34] : memref<1x128xf32, #tpu.memory_space<vmem>>, vector<1x128xf32>
    %60 = vector.broadcast %59 : vector<1x128xf32> to vector<8x128xf32>
    %61 = arith.addf %58, %60 : vector<8x128xf32>
    %c0_35 = arith.constant 0 : index
    %c0_36 = arith.constant 0 : index
    %62 = vector.load %arg11[%c0_35, %c0_36] : memref<8x128xf32, #tpu.memory_space<vmem>>, vector<8x128xf32>
    tpu.vector_store %arg11[%c0_35, %c0_36], %61 {strides = array<i32>} : memref<8x128xf32, #tpu.memory_space<vmem>>, vector<8x128xf32>,
    return
  }
}

</mosaic_0001>

<bundles_post_ra>
// kernel: tpu_custom_call.1
= control target key start
LH: loop header
LB: loop body
LE: loop exit
PB: predicated region body
PF: predicated region fallthrough
CT: control target
= control target key end

     0   :  { %16 = vsyncpa [#allocation3], 0  ;;  %s1022_s0 = inlined_call_operand.hbm [shape: f32[8,128], index: 0, kind: input, shape index: {}]   ;;  %s1023_s1 = inlined_call_operand.hbm [shape: f32[128,128], index: 1, kind: input, shape index: {}]   ;;  %s1024_s2 = inlined_call_operand.vmem [shape: f32[1,128], index: 2, kind: input, shape index: {}]   ;;  %s1025_s3 = inlined_call_operand.vmem [shape: f32[1,128], index: 3, kind: input, shape index: {}]   ;;  %s1026_s4 = inlined_call_operand.vmem [shape: f32[1,128], index: 4, kind: input, shape index: {}]   ;;  %s1027_s5 = inlined_call_operand.hbm [shape: f32[128,128], index: 5, kind: input, shape index: {}]   ;;  %s1028_s6 = inlined_call_operand.vmem [shape: f32[1,128], index: 6, kind: input, shape index: {}]   ;;  %s1029_s7 = inlined_call_operand.vmem [shape: f32[1,128], index: 7, kind: input, shape index: {}]   ;;  %s1030_s8 = inlined_call_operand.vmem [shape: f32[1,128], index: 8, kind: input, shape index: {}]   ;;  %s1031_s9 = inlined_call_operand.hbm [shape: f32[128,128], index: 9, kind: input, shape index: {}]   ;;  %s1032_s10 = inlined_call_operand.vmem [shape: f32[1,128], index: 10, kind: input, shape index: {}]   ;;  %s1033_s11 = inlined_call_operand.hbm [shape: f32[8,128], index: 11, kind: output, shape index: {}]  }
   0x1   :  { %17 = vsyncpa [#allocation6], 0 }
   0x2   :  { %18 = vsyncpa [#allocation9], 0 }
   0x3   :  { %19 = vsyncpa [#allocation4], 0  ;;  %s828_s17 = smov [#allocation5]   ;;  %s710_s21 = scalar_lea.hbm %s1023_s1, 2048 }
   0x4   :  { %s35_s18 = sshll.u32 %s828_s17, 4  ;;  %p711_p0 = scmp.ne.s32.totalorder %s1023_s1, %s710_s21  ;;  %s36_s18 = int_to_ptr.vmem [resolvable:$true] %s35_s18 }
   0x5   :  { %p714_p1 = scmp.lt.u32.totalorder %s710_s21, %s1023_s1 }
   0x7   :  { %p716_p2 = pnand %p714_p1, %p711_p0 }
   0x9   :  { %719 = shalt.err (!%p716_p2)
}
   0xa   :  { %s720_s26 = scalar_lea.vmem %s36_s18, 2048  ;;  %p725_p4 = scmp.lt.s32.totalorder %s36_s18, %s36_s18 }
   0xb   :  { %p721_p3 = scmp.ne.s32.totalorder %s36_s18, %s720_s26  ;;  %p726_p5 = scmp.lt.s32.totalorder %s720_s26, %s720_s26 }
   0xd   :  { %p727_p6 = por %p726_p5, %p725_p4 }
   0xf   :  { %p728_p7 = pnand %p727_p6, %p721_p3 }
  0x11   :  { %731 = shalt.err (!%p728_p7)
}
  0x12   :  { %s829_s27 = smov 128   ;;  %s830_s28 = smov 8  }
  0x13   :  { %41 = dma.hbm_to_vmem [thread:$0]  %s1023_s1, 2048, %s36_s18, [#allocation6], %s829_s27, %s829_s27, %s830_s28  }
  0x14   :  { %s831_s12 = smov [#allocation2]   ;;  %s832_s14 = smov [#allocation7]  }
  0x15   :  { %s26_s13 = sshll.u32 %s831_s12, 4  ;;  %s53_s15 = sshll.u32 %s832_s14, 4  ;;  %s27_s13 = int_to_ptr.vmem [resolvable:$true] %s26_s13  ;;  %s54_s15 = int_to_ptr.vmem [resolvable:$true] %s53_s15 }
  0x16   :  { %s732_s19 = scalar_lea.hbm %s1022_s0, 128 }
  0x17   :  { %p733_p8 = scmp.ne.s32.totalorder %s1022_s0, %s732_s19  ;;  %p736_p9 = scmp.lt.u32.totalorder %s732_s19, %s1022_s0 }
  0x19   :  { %p738_p10 = pnand %p736_p9, %p733_p8 }
  0x1b   :  { %741 = shalt.err (!%p738_p10)
}
  0x1c   :  { %s742_s1 = scalar_lea.vmem %s27_s13, 128  ;;  %p747_p12 = scmp.lt.s32.totalorder %s27_s13, %s27_s13 }
  0x1d   :  { %p743_p11 = scmp.ne.s32.totalorder %s27_s13, %s742_s1  ;;  %p748_p13 = scmp.lt.s32.totalorder %s742_s1, %s742_s1 }
  0x1f   :  { %p749_p0 = por %p748_p13, %p747_p12 }
  0x21   :  { %p750_p1 = pnand %p749_p0, %p743_p11 }
  0x23   :  { %753 = shalt.err (!%p750_p1)
}
  0x24   :  { %29 = dma.hbm_to_vmem [thread:$0]  %s1022_s0, 128, %s27_s13, [#allocation3]  }
  0x25   :  { %s754_s29 = scalar_lea.hbm %s1027_s5, 2048 }
  0x26   :  { %p755_p2 = scmp.ne.s32.totalorder %s1027_s5, %s754_s29  ;;  %p758_p3 = scmp.lt.u32.totalorder %s754_s29, %s1027_s5 }
  0x28   :  { %p760_p4 = pnand %p758_p3, %p755_p2 }
  0x2a   :  { %763 = shalt.err (!%p760_p4)
}
  0x2b   :  { %s764_s17 = scalar_lea.vmem %s54_s15, 2048  ;;  %p769_p6 = scmp.lt.s32.totalorder %s54_s15, %s54_s15 }
  0x2c   :  { %p765_p5 = scmp.ne.s32.totalorder %s54_s15, %s764_s17  ;;  %p770_p7 = scmp.lt.s32.totalorder %s764_s17, %s764_s17 }
  0x2e   :  { %p771_p8 = por %p770_p7, %p769_p6 }
  0x30   :  { %p772_p9 = pnand %p771_p8, %p765_p5 }
  0x32   :  { %775 = shalt.err (!%p772_p9)
}
  0x33   :  { %59 = dma.hbm_to_vmem [thread:$0]  %s1027_s5, 2048, %s54_s15, [#allocation6], %s829_s27, %s829_s27, %s830_s28  }
  0x34   :  { %s833_s19 = smov [#allocation8]   ;;  %s776_s23 = scalar_lea.hbm %s1031_s9, 2048 }
  0x35   :  { %s71_s20 = sshll.u32 %s833_s19, 4  ;;  %p777_p10 = scmp.ne.s32.totalorder %s1031_s9, %s776_s23  ;;  %s72_s20 = int_to_ptr.vmem [resolvable:$true] %s71_s20 }
  0x36   :  { %p780_p11 = scmp.lt.u32.totalorder %s776_s23, %s1031_s9 }
  0x38   :  { %p782_p12 = pnand %p780_p11, %p777_p10 }
  0x3a   :  { %785 = shalt.err (!%p782_p12)
}
  0x3b   :  { %s786_s26 = scalar_lea.vmem %s72_s20, 2048  ;;  %p791_p0 = scmp.lt.s32.totalorder %s72_s20, %s72_s20 }
  0x3c   :  { %p787_p13 = scmp.ne.s32.totalorder %s72_s20, %s786_s26  ;;  %p792_p1 = scmp.lt.s32.totalorder %s786_s26, %s786_s26 }
  0x3e   :  { %p793_p2 = por %p792_p1, %p791_p0 }
  0x40   :  { %p794_p3 = pnand %p793_p2, %p787_p13 }
  0x42   :  { %797 = shalt.err (!%p794_p3)
}
  0x43   :  { %77 = dma.hbm_to_vmem [thread:$0]  %s1031_s9, 2048, %s72_s20, [#allocation9], %s829_s27, %s829_s27, %s830_s28  }
  0x44   :  { %820 = dma.done.wait [#allocation3], 128  }
  0x45   :  { %821 = vsyncadd [#allocation3], 4294967168 }
  0x46   :  { %822 = dma.done.wait [#allocation6], 4096  }
  0x47   :  { %823 = vsyncadd [#allocation6], 4294963200 }
  0x48   :  { %824 = dma.done.wait [#allocation9], 2048  }
  0x49   :  { %825 = vsyncadd [#allocation9], 4294965248  ;;  %v834_v0 = vmov 0.0|0.0   ;;  %vm835_vm0 = vmmov 0   ;;  %v836_v1 = vmov 0.0   ;;  %v93_v2 = vld [vmem:[#allocation5] sm:$0xff] }
  0x4a   :  { %624 = vmatprep.subr.bf16.mxu0 %v834_v0  ;;  %551 = vmatprep.mubr.msk.f32.mxu0 %vm835_vm0, %v836_v1  ;;  %v94_v3 = vld [vmem:[#allocation5 + $0x8] sm:$0xff]  ;;  %v95_v4 = vld [vmem:[#allocation5 + $0x10] sm:$0xff]  ;;  %v96_v6 = vld [vmem:[#allocation5 + $0x18] sm:$0xff]  ;;  %s837_s13 = smov [#allocation10]  }
  0x4b   :  { %648 = vmatprep.subr.bf16.mxu1 %v834_v0  ;;  %586 = vmatprep.mubr.msk.f32.mxu1 %vm835_vm0, %v836_v1  ;;  %v625_v5 = vpack.c.bf16 %v94_v3, %v93_v2  ;;  %v628_v7 = vpack.c.bf16 %v96_v6, %v95_v4  ;;  %v97_v8 = vld [vmem:[#allocation5 + $0x20] sm:$0xff]  ;;  %v98_v9 = vld [vmem:[#allocation5 + $0x28] sm:$0xff]  ;;  %v99_v11 = vld [vmem:[#allocation5 + $0x30] sm:$0xff]  ;;  %s452_s19 = sshll.u32 %s837_s13, 4  ;;  %s453_s19 = int_to_ptr.vmem [resolvable:$true] %s452_s19 }
  0x4c   :  { %v631_v10 = vpack.c.bf16 %v98_v9, %v97_v8  ;;  %v100_v12 = vld [vmem:[#allocation5 + $0x38] sm:$0xff]  ;;  %v101_v14 = vld [vmem:[#allocation5 + $0x40] sm:$0xff]  ;;  %v102_v15 = vld [vmem:[#allocation5 + $0x48] sm:$0xff]  ;;  %p803_p5 = scmp.lt.s32.totalorder %s453_s19, %s453_s19 }
  0x4d   :  { %626 = vmatpush3.bf16.msra.mxu0 %v625_v5  ;;  %v634_v13 = vpack.c.bf16 %v100_v12, %v99_v11  ;;  %v637_v16 = vpack.c.bf16 %v102_v15, %v101_v14  ;;  %v103_v17 = vld [vmem:[#allocation5 + $0x50] sm:$0xff]  ;;  %v104_v18 = vld [vmem:[#allocation5 + $0x58] sm:$0xff]  ;;  %v105_v20 = vld [vmem:[#allocation5 + $0x60] sm:$0xff] }
  0x4e   :  { %627 = vmatprep.subr.bf16.mxu0 %v834_v0  ;;  %v640_v19 = vpack.c.bf16 %v104_v18, %v103_v17  ;;  %v106_v21 = vld [vmem:[#allocation5 + $0x68] sm:$0xff]  ;;  %v107_v23 = vld [vmem:[#allocation5 + $0x70] sm:$0xff]  ;;  %v108_v24 = vld [vmem:[#allocation5 + $0x78] sm:$0xff] }
  0x4f   :  { %v643_v22 = vpack.c.bf16 %v106_v21, %v105_v20  ;;  %v646_v25 = vpack.c.bf16 %v108_v24, %v107_v23  ;;  %v92_v26 = vld [vmem:[#allocation2] sm:$0xff]  ;;  %v223_v27 = vld [vmem:[#allocation7] sm:$0xff]  ;;  %v224_v28 = vld [vmem:[#allocation7 + $0x8] sm:$0xff] }
  0x50   :  { %v649_v29 = vpack.c.bf16 %v224_v28, %v223_v27  ;;  %v225_v30 = vld [vmem:[#allocation7 + $0x10] sm:$0xff]  ;;  %v226_v31 = vld [vmem:[#allocation7 + $0x18] sm:$0xff]  ;;  %v227_v33 = vld [vmem:[#allocation7 + $0x20] sm:$0xff] }
  0x51   :  { %629 = vmatpush3.bf16.msra.mxu0 %v628_v7  ;;  %v652_v32 = vpack.c.bf16 %v226_v31, %v225_v30  ;;  %v228_v34 = vld [vmem:[#allocation7 + $0x28] sm:$0xff]  ;;  %v229_v36 = vld [vmem:[#allocation7 + $0x30] sm:$0xff]  ;;  %v230_v37 = vld [vmem:[#allocation7 + $0x38] sm:$0xff] }
  0x52   :  { %630 = vmatprep.subr.bf16.mxu0 %v834_v0  ;;  %650 = vmatpush3.bf16.msra.mxu1 %v649_v29  ;;  %v655_v35 = vpack.c.bf16 %v228_v34, %v227_v33  ;;  %v658_v38 = vpack.c.bf16 %v230_v37, %v229_v36  ;;  %v231_v39 = vld [vmem:[#allocation7 + $0x40] sm:$0xff]  ;;  %v232_v40 = vld [vmem:[#allocation7 + $0x48] sm:$0xff]  ;;  %v233_v42 = vld [vmem:[#allocation7 + $0x50] sm:$0xff] }
  0x53   :  { %651 = vmatprep.subr.bf16.mxu1 %v834_v0  ;;  %v661_v41 = vpack.c.bf16 %v232_v40, %v231_v39  ;;  %v234_v43 = vld [vmem:[#allocation7 + $0x58] sm:$0xff]  ;;  %v235_v45 = vld [vmem:[#allocation7 + $0x60] sm:$0xff]  ;;  %v236_v46 = vld [vmem:[#allocation7 + $0x68] sm:$0xff] }
  0x54   :  { %v664_v44 = vpack.c.bf16 %v234_v43, %v233_v42  ;;  %v667_v47 = vpack.c.bf16 %v236_v46, %v235_v45  ;;  %v237_v48 = vld [vmem:[#allocation7 + $0x70] sm:$0xff]  ;;  %v238_v49 = vld [vmem:[#allocation7 + $0x78] sm:$0xff]  ;;  %v352_v20 = vld [vmem:[#allocation8] sm:$0xff] }
  0x55   :  { %632 = vmatpush3.bf16.msra.mxu0 %v631_v10  ;;  %v670_v50 = vpack.c.bf16 %v238_v49, %v237_v48  ;;  %v463_v51 = vld [vmem:[%s1024_s2] ss:$0 sm:$0xff]  ;;  %v209_v10 = vlaneseq  ;;  %v353_v21 = vld [vmem:[#allocation8 + $0x8] sm:$0xff]  ;;  %v354_v23 = vld [vmem:[#allocation8 + $0x10] sm:$0xff] }
  0x56   :  { %633 = vmatprep.subr.bf16.mxu0 %v834_v0  ;;  %653 = vmatpush3.bf16.msra.mxu1 %v652_v32  ;;  %v204_v12 = vld [vmem:[%s1025_s3] sm:$0x1]  ;;  %v357_v27 = vld [vmem:[#allocation8 + $0x28] sm:$0xff]  ;;  %v358_v29 = vld [vmem:[#allocation8 + $0x30] sm:$0xff] }
  0x57   :  { %654 = vmatprep.subr.bf16.mxu1 %v834_v0  ;;  %v978_v11 = vshrl.u32 %v209_v10, 7  ;;  %v464_v17 = vld [vmem:[%s1026_s4] ss:$0 sm:$0xff]  ;;  %v360_v32 = vld [vmem:[#allocation8 + $0x40] sm:$0xff]  ;;  %v361_v33 = vld [vmem:[#allocation8 + $0x48] sm:$0xff] }
  0x58   :  { %v355_v24 = vld [vmem:[#allocation8 + $0x18] sm:$0xff]  ;;  %v685_v34 = vpack.c.bf16 %v361_v33, %v360_v32  ;;  %v365_v39 = vld [vmem:[#allocation8 + $0x68] sm:$0xff] }
  0x59   :  { %635 = vmatpush3.bf16.msra.mxu0 %v634_v13  ;;  %v211_v13 = vsub.s32 0, %v978_v11  ;;  %v359_v30 = vld [vmem:[#allocation8 + $0x38] sm:$0xff] }
  0x5a   :  { %636 = vmatprep.subr.bf16.mxu0 %v834_v0  ;;  %656 = vmatpush3.bf16.msra.mxu1 %v655_v35  ;;  %v682_v31 = vpack.c.bf16 %v359_v30, %v358_v29  ;;  %v362_v35 = vld [vmem:[#allocation8 + $0x50] sm:$0xff]  ;;  %v363_v36 = vld [vmem:[#allocation8 + $0x58] sm:$0xff] }
  0x5b   :  { %657 = vmatprep.subr.bf16.mxu1 %v834_v0  ;;  %v688_v37 = vpack.c.bf16 %v363_v36, %v362_v35  ;;  %v367_v42 = vld [vmem:[#allocation8 + $0x78] sm:$0xff] }
  0x5d   :  { %638 = vmatpush3.bf16.msra.mxu0 %v637_v16 }
  0x5e   :  { %639 = vmatprep.subr.bf16.mxu0 %v834_v0  ;;  %659 = vmatpush3.bf16.msra.mxu1 %v658_v38  ;;  %v364_v38 = vld [vmem:[#allocation8 + $0x60] sm:$0xff] }
  0x5f   :  { %660 = vmatprep.subr.bf16.mxu1 %v834_v0  ;;  %v691_v40 = vpack.c.bf16 %v365_v39, %v364_v38 }
  0x61   :  { %641 = vmatpush3.bf16.msra.mxu0 %v640_v19 }
  0x62   :  { %642 = vmatprep.subr.bf16.mxu0 %v834_v0  ;;  %662 = vmatpush3.bf16.msra.mxu1 %v661_v41  ;;  %v366_v41 = vld [vmem:[#allocation8 + $0x70] sm:$0xff] }
  0x63   :  { %663 = vmatprep.subr.bf16.mxu1 %v834_v0  ;;  %v694_v43 = vpack.c.bf16 %v367_v42, %v366_v41 }
  0x65   :  { %644 = vmatpush3.bf16.msra.mxu0 %v643_v22  ;;  %v673_v22 = vpack.c.bf16 %v353_v21, %v352_v20 }
  0x66   :  { %645 = vmatprep.subr.bf16.mxu0 %v834_v0  ;;  %665 = vmatpush3.bf16.msra.mxu1 %v664_v44  ;;  %v465_v44 = vld [vmem:[%s1028_s6] ss:$0 sm:$0xff] }
  0x67   :  { %666 = vmatprep.subr.bf16.mxu1 %v834_v0 }
  0x69   :  { %647 = vmatpush3.bf16.msra.mxu0 %v646_v25  ;;  %v676_v25 = vpack.c.bf16 %v355_v24, %v354_v23 }
  0x6a   :  { %672 = vmatprep.subr.bf16.mxu0 %v834_v0  ;;  %668 = vmatpush3.bf16.msra.mxu1 %v667_v47 }
  0x6b   :  { %669 = vmatprep.subr.bf16.mxu1 %v834_v0 }
  0x6c   :  { %552 = vmatmul.mubr.f32.vlgmr.msra.gmra.mrb[0].mxu0 %v92_v26  ;;  %v356_v26 = vld [vmem:[#allocation8 + $0x20] sm:$0xff] }
  0x6d   :  { %621 = vmatprep.mubr.msk.f32.mxu0 %vm835_vm0, %v836_v1  ;;  %674 = vmatpush3.bf16.msra.mxu0 %v673_v22  ;;  %v679_v28 = vpack.c.bf16 %v357_v27, %v356_v26 }
  0x6e   :  { %671 = vmatpush3.bf16.msra.mxu1 %v670_v50  ;;  %675 = vmatprep.subr.bf16.mxu0 %v834_v0 }
  0x71   :  { %677 = vmatpush3.bf16.msra.mxu0 %v676_v25 }
  0x72   :  { %678 = vmatprep.subr.bf16.mxu0 %v834_v0 }
  0x75   :  { %680 = vmatpush3.bf16.msra.mxu0 %v679_v28 }
  0x76   :  { %681 = vmatprep.subr.bf16.mxu0 %v834_v0 }
  0x79   :  { %683 = vmatpush3.bf16.msra.mxu0 %v682_v31 }
  0x7a   :  { %684 = vmatprep.subr.bf16.mxu0 %v834_v0 }
  0x7d   :  { %686 = vmatpush3.bf16.msra.mxu0 %v685_v34 }
  0x7e   :  { %687 = vmatprep.subr.bf16.mxu0 %v834_v0 }
  0x81   :  { %689 = vmatpush3.bf16.msra.mxu0 %v688_v37 }
  0x82   :  { %690 = vmatprep.subr.bf16.mxu0 %v834_v0 }
  0x85   :  { %692 = vmatpush3.bf16.msra.mxu0 %v691_v40 }
  0x86   :  { %693 = vmatprep.subr.bf16.mxu0 %v834_v0 }
  0x89   :  { %695 = vmatpush3.bf16.msra.mxu0 %v694_v43 }
 0x13f   :  { %v182_v52 = vpop.f32.mrb[0].mxu0 }
 0x140   :  { %v183_v53 = vadd.f32 %v463_v51, %v182_v52  ;;  %v553_v54 = vpop.f32.mrb[1].mxu0 }
 0x142   :  { %v186_v55 = vmax.f32 %v183_v53, 0.0 }
 0x144   :  { %v187_v56 = vrot.slane %v186_v55, 4 }
 0x146   :  { %v188_v57 = vadd.f32 %v187_v56, %v186_v55 }
 0x148   :  { %v189_v58 = vrot.slane %v188_v57, 2 }
 0x14a   :  { %v190_v59 = vadd.f32 %v189_v58, %v188_v57 }
 0x14c   :  { %v191_v60 = vrot.slane %v190_v59, 1 }
 0x14e   :  { %v192_v61 = vadd.f32 %v191_v60, %v190_v59 }
 0x150   :  { %v194_v62 = vmul.f32 0.125, %v192_v61 }
 0x152   :  { %v195_v63 = vsub.f32 %v186_v55, %v194_v62 }
 0x154   :  { %v196_v1 = vmul.f32 %v195_v63, %v195_v63 }
 0x156   :  { %v197_v2 = vrot.slane %v196_v1, 4 }
 0x158   :  { %v198_v3 = vadd.f32 %v197_v2, %v196_v1  ;;  %v333_v2 = vld [vmem:[%s1029_s7] sm:$0x1]  ;;  %s798_s7 = scalar_lea.vmem %s453_s19, 128 }
 0x159   :  { %p799_p4 = scmp.ne.s32.totalorder %s453_s19, %s798_s7  ;;  %p804_p6 = scmp.lt.s32.totalorder %s798_s7, %s798_s7 }
 0x15a   :  { %v199_v4 = vrot.slane %v198_v3, 2 }
 0x15b   :  { %p805_p7 = por %p804_p6, %p803_p5 }
 0x15c   :  { %v200_v5 = vadd.f32 %v199_v4, %v198_v3 }
 0x15d   :  { %p806_p8 = pnand %p805_p7, %p799_p4 }
 0x15e   :  { %v201_v6 = vrot.slane %v200_v5, 1 }
 0x160   :  { %v202_v7 = vadd.f32 %v201_v6, %v200_v5  ;;  %v466_v6 = vld [vmem:[%s1030_s8] ss:$0 sm:$0xff] }
 0x162   :  { %v203_v8 = vmul.f32 0.125, %v202_v7 }
 0x164   :  { %v205_v9 = vadd.f32 1e-05, %v203_v8 }
 0x166   :  { %706 = vrsqrt.f32 %v205_v9  ;;  %v467_v9 = vld [vmem:[%s1032_s10] ss:$0 sm:$0xff] }
 0x170   :  { %v707_v14 = vpop.eup %706 }
 0x171   :  { %v207_v15 = vmul.f32 %v707_v14, %v204_v12 }
 0x173   :  { %v212_v16 = vrot.slane %v207_v15, %v211_v13 }
 0x175   :  { %v214_v18 = vmul.f32 %v212_v16, %v195_v63 }
 0x177   :  { %v222_v19 = vadd.f32 %v464_v17, %v214_v18 }
 0x179   :  { %587 = vmatmul.mubr.f32.vlgmr.msra.gmra.mrb[0].mxu1 %v222_v19 }
 0x24c   :  { %v312_v45 = vpop.f32.mrb[0].mxu1 }
 0x24d   :  { %v313_v46 = vadd.f32 %v465_v44, %v312_v45  ;;  %v588_v47 = vpop.f32.mrb[1].mxu1 }
 0x24f   :  { %v316_v48 = vmax.f32 %v313_v46, 0.0 }
 0x251   :  { %v317_v49 = vrot.slane %v316_v48, 4 }
 0x253   :  { %v318_v50 = vadd.f32 %v317_v49, %v316_v48 }
 0x255   :  { %v319_v51 = vrot.slane %v318_v50, 2 }
 0x257   :  { %v320_v52 = vadd.f32 %v319_v51, %v318_v50 }
 0x259   :  { %v321_v53 = vrot.slane %v320_v52, 1 }
 0x25b   :  { %v322_v54 = vadd.f32 %v321_v53, %v320_v52 }
 0x25d   :  { %v323_v55 = vmul.f32 0.125, %v322_v54 }
 0x25f   :  { %v324_v0 = vsub.f32 %v316_v48, %v323_v55 }
 0x261   :  { %v325_v56 = vmul.f32 %v324_v0, %v324_v0 }
 0x263   :  { %v326_v57 = vrot.slane %v325_v56, 4 }
 0x265   :  { %v327_v58 = vadd.f32 %v326_v57, %v325_v56 }
 0x267   :  { %v328_v59 = vrot.slane %v327_v58, 2 }
 0x269   :  { %v329_v60 = vadd.f32 %v328_v59, %v327_v58 }
 0x26b   :  { %v330_v61 = vrot.slane %v329_v60, 1 }
 0x26d   :  { %v331_v62 = vadd.f32 %v330_v61, %v329_v60 }
 0x26f   :  { %v332_v63 = vmul.f32 0.125, %v331_v62 }
 0x271   :  { %v334_v1 = vadd.f32 1e-05, %v332_v63 }
 0x273   :  { %708 = vrsqrt.f32 %v334_v1 }
 0x27d   :  { %v709_v3 = vpop.eup %708 }
 0x27e   :  { %v336_v4 = vmul.f32 %v709_v3, %v333_v2 }
 0x280   :  { %v341_v5 = vrot.slane %v336_v4, %v211_v13 }
 0x282   :  { %v343_v7 = vmul.f32 %v341_v5, %v324_v0 }
 0x284   :  { %v351_v8 = vadd.f32 %v466_v6, %v343_v7 }
 0x286   :  { %622 = vmatmul.mubr.f32.vlgmr.msra.gmra.mrb[2].mxu0 %v351_v8 }
 0x359   :  { %v441_v10 = vpop.f32.mrb[2].mxu0 }
 0x35a   :  { %v442_v12 = vadd.f32 %v467_v9, %v441_v10  ;;  %v623_v14 = vpop.f32.mrb[3].mxu0 }
 0x35c   :  { %445 = vst [vmem:[#allocation10] sm:$0xff] %v442_v12 }
 0x35d   :  { %809 = shalt.err (!%p806_p8)
}
 0x35e   :  { %s810_s21 = scalar_lea.hbm %s1033_s11, 128 }
 0x35f   :  { %p811_p9 = scmp.ne.s32.totalorder %s1033_s11, %s810_s21  ;;  %p814_p10 = scmp.lt.u32.totalorder %s810_s21, %s1033_s11 }
 0x361   :  { %p816_p11 = pnand %p814_p10, %p811_p9 }
 0x363   :  { %819 = shalt.err (!%p816_p11)
}
 0x364   :  { %455 = dma.vmem_to_hbm [thread:$0]  %s453_s19, 128, %s1033_s11, [#allocation4]  }
 0x365   :  { %826 = dma.done.wait [#allocation4], 128  }
 0x366   :  { %827 = vsyncadd [#allocation4], 4294967168 }
 0x367   :  { %459 = vsyncpa [#allocation3], 1 }
 0x368   :  { %460 = vsyncpa [#allocation6], 1 }
 0x369   :  { %461 = vsyncpa [#allocation9], 1 }
 0x36a   :  { %462 = vsyncpa [#allocation4], 1 }

</bundles_post_ra>
